<compile_context>
chip_gen: v7x
topology: tpu7x:2x2x1
jax: 0.10.0
libtpu: 0.0.40
codegen_flags: <defaults>
</compile_context>

<pallas_src>
import functools
import math

import jax
import jax.numpy as jnp
from jax.experimental import pallas as pl
from jax.experimental.pallas import tpu as pltpu

_INV_SQRT2 = 0.7071067811865476


@functools.lru_cache(maxsize=None)
def _vmem_limit_bytes():
    """~3/4 of physical VMEM, capped at 100 MiB (=> ~96 MiB v5e/v6e, ~48 MiB v7x)."""
    cap = 64 * 1024 * 1024
    try:
        cap = int(pltpu.get_tpu_info().vmem_capacity_bytes)
    except Exception:
        pass
    return max(32 * 1024 * 1024, min(cap * 3 // 4, 100 * 1024 * 1024))


def _cparams(*sems):
    return pltpu.CompilerParams(dimension_semantics=sems,
                                vmem_limit_bytes=_vmem_limit_bytes())


def _pick_tile(dim, target, align):
    """Largest multiple of `align` that divides `dim` and is <= `target`; else `dim`."""
    if dim <= target:
        return dim
    t = (target // align) * align
    while t >= align:
        if dim % t == 0:
            return t
        t -= align
    return dim


def _bytes(shape, dtype):
    n = 1
    for d in shape:
        n *= int(d)
    return n * jnp.dtype(dtype).itemsize


def _assert_fits(blocks, scratch_bytes=0):
    """Guard against _pick_tile's full-dim fallback overflowing the VMEM budget."""
    limit = _vmem_limit_bytes()
    total = 2 * sum(_bytes(s, d) for s, d in blocks) + scratch_bytes  # 2x: double buffering
    if total > limit:
        raise ValueError(
            f"Pallas block working set {total / 2**20:.1f} MiB exceeds VMEM limit "
            f"{limit / 2**20:.1f} MiB; shrink the tile sizes.")


# ---------------------------------------------------------------------------
# 1) Tiled linear + bias (fused QKV projection)
# ---------------------------------------------------------------------------

def _linear_bias_kernel(x_ref, w_ref, b_ref, o_ref, acc_ref):
    k = pl.program_id(2)

    @pl.when(k == 0)
    def _():
        acc_ref[...] = jnp.zeros_like(acc_ref)

    acc_ref[...] += jnp.dot(x_ref[...].astype(w_ref.dtype), w_ref[...],
                            preferred_element_type=jnp.float32)

    @pl.when(k == pl.num_programs(2) - 1)
    def _():
        o_ref[...] = (acc_ref[...] + b_ref[...].astype(jnp.float32)).astype(o_ref.dtype)


def linear_bias(x, w, b, *, tm=512, tn=512, tk=1024):
    """y = x @ w + b.  x: (M, K), w: (K, N), b: (1, N) -> (M, N)."""
    M, K = x.shape
    N = w.shape[1]
    tm = _pick_tile(M, tm, 8)
    tn = _pick_tile(N, tn, 128)
    tk = _pick_tile(K, tk, 128)        # tk -> full K when K <= 1024: reduction axis collapses
    _assert_fits([((tm, tk), x.dtype), ((tk, tn), w.dtype), ((1, tn), b.dtype),
                  ((tm, tn), x.dtype)], scratch_bytes=tm * tn * 4)
    return pl.pallas_call(
        _linear_bias_kernel,
        out_shape=jax.ShapeDtypeStruct((M, N), x.dtype),
        grid=(M // tm, N // tn, K // tk),
        in_specs=[
            pl.BlockSpec((tm, tk), lambda i, j, k: (i, k)),
            pl.BlockSpec((tk, tn), lambda i, j, k: (k, j)),
            pl.BlockSpec((1, tn), lambda i, j, k: (0, j)),
        ],
        out_specs=pl.BlockSpec((tm, tn), lambda i, j, k: (i, j)),
        scratch_shapes=[pltpu.VMEM((tm, tn), jnp.float32)],
        compiler_params=_cparams("parallel", "parallel", "arbitrary"),
    )(x, w, b)


# ---------------------------------------------------------------------------
# 2) Fused attention + BertMixSelfOutput (dense + mix + LayerNorm) per batch
# ---------------------------------------------------------------------------

def _attn_block_kernel(qkv_ref, mask_ref, res_ref, w_ref, b_ref, g_ref, bt_ref,
                       o_ref, *, nh, hd, eps, ratio):
    H = nh * hd
    qkv = qkv_ref[0]                                  # (S, 3H); 1/sqrt(hd) folded into Wq
    m = mask_ref[0].astype(jnp.float32)               # (1, S) additive mask

    ctx_parts = []
    for h in range(nh):                               # static unroll; only one (S,S) live
        q = qkv[:, h * hd:(h + 1) * hd]
        k = qkv[:, H + h * hd:H + (h + 1) * hd]
        v = qkv[:, 2 * H + h * hd:2 * H + (h + 1) * hd]
        s = jax.lax.dot_general(q, k, (((1,), (1,)), ((), ())),
                                preferred_element_type=jnp.float32)   # (S, S)
        s = s + m
        s_max = jnp.max(s, axis=-1, keepdims=True)
        p = jnp.exp(s - s_max)
        l = jnp.sum(p, axis=-1, keepdims=True)
        p = p * pl.reciprocal(l, approx=True)          # EUP reciprocal
        # attention-prob dropout is identity in eval mode
        ctx_parts.append(jnp.dot(p.astype(v.dtype), v,
                                 preferred_element_type=jnp.float32))  # (S, hd)

    ctx = jnp.concatenate(ctx_parts, axis=-1)          # (S, H): heads merged on lanes, in VMEM
    y = jnp.dot(ctx.astype(w_ref.dtype), w_ref[...],   # full-H-deep MXU contraction
                preferred_element_type=jnp.float32) + b_ref[...].astype(jnp.float32)
    # hidden dropout is identity in eval mode
    x = res_ref[0].astype(jnp.float32)
    if ratio is not None:
        y = ratio * y + (1.0 - ratio) * x
    else:
        y = y + x
    mean = jnp.mean(y, axis=-1, keepdims=True)
    var = jnp.mean(jnp.square(y - mean), axis=-1, keepdims=True)
    yn = (y - mean) * jax.lax.rsqrt(var + eps)
    o_ref[0] = (yn * g_ref[...].astype(jnp.float32)
                + bt_ref[...].astype(jnp.float32)).astype(o_ref.dtype)


def attention_block(qkv, mask_add, x, w, b, gamma, beta, *, num_heads, eps, ratio):
    """qkv: (B, S, 3H) fused Q|K|V activation; returns LN(mix(merge(attn) @ W + b, x))."""
    B, S, H = x.shape
    nh = num_heads
    hd = H // nh
    _assert_fits([((1, S, 3 * H), qkv.dtype), ((1, 1, S), mask_add.dtype),
                  ((1, S, H), x.dtype), ((H, H), w.dtype), ((1, H), b.dtype),
                  ((1, H), gamma.dtype), ((1, H), beta.dtype), ((1, S, H), x.dtype)],
                 scratch_bytes=(S * S + 2 * S * H) * 4)   # rough in-kernel temporaries
    kern = functools.partial(_attn_block_kernel, nh=nh, hd=hd, eps=eps, ratio=ratio)
    # grid=(B,) parallel: on v7x each TensorCore takes a batch slice.
    return pl.pallas_call(
        kern,
        out_shape=jax.ShapeDtypeStruct((B, S, H), x.dtype),
        grid=(B,),
        in_specs=[
            pl.BlockSpec((1, S, 3 * H), lambda bq: (bq, 0, 0)),   # fused QKV activation
            pl.BlockSpec((1, 1, S), lambda bq: (bq, 0, 0)),       # additive mask (not repeated)
            pl.BlockSpec((1, S, H), lambda bq: (bq, 0, 0)),       # residual input
            pl.BlockSpec((H, H), lambda bq: (0, 0)),              # VMEM-resident dense W
            pl.BlockSpec((1, H), lambda bq: (0, 0)),              # dense bias
            pl.BlockSpec((1, H), lambda bq: (0, 0)),              # LN gamma
            pl.BlockSpec((1, H), lambda bq: (0, 0)),              # LN beta
        ],
        out_specs=pl.BlockSpec((1, S, H), lambda bq: (bq, 0, 0)), # lane-dense (S, H)
        compiler_params=_cparams("parallel"),
    )(qkv, mask_add, x, w, b, gamma, beta)


# ---------------------------------------------------------------------------
# 3) Fused FFN: gelu(x@Wi+bi)@Wo + bo + x, LayerNorm — 4H intermediate stays in VMEM
# ---------------------------------------------------------------------------

def _ffn_ln_kernel(x_ref, wi_ref, bi_ref, wo_ref, bo_ref, g_ref, bt_ref, o_ref,
                   acc_ref, *, eps):
    j = pl.program_id(1)

    @pl.when(j == 0)
    def _():
        acc_ref[...] = jnp.zeros_like(acc_ref)

    x = x_ref[...]
    h = jnp.dot(x.astype(wi_ref.dtype), wi_ref[...],
                preferred_element_type=jnp.float32) + bi_ref[...].astype(jnp.float32)
    h = 0.5 * h * (1.0 + jax.lax.erf(h * _INV_SQRT2))        # exact gelu, f32
    acc_ref[...] += jnp.dot(h.astype(wo_ref.dtype), wo_ref[...],
                            preferred_element_type=jnp.float32)

    @pl.when(j == pl.num_programs(1) - 1)
    def _():
        y = acc_ref[...] + bo_ref[...].astype(jnp.float32) + x.astype(jnp.float32)
        mean = jnp.mean(y, axis=-1, keepdims=True)
        var = jnp.mean(jnp.square(y - mean), axis=-1, keepdims=True)
        yn = (y - mean) * jax.lax.rsqrt(var + eps)
        o_ref[...] = (yn * g_ref[...].astype(jnp.float32)
                      + bt_ref[...].astype(jnp.float32)).astype(o_ref.dtype)


def ffn_layernorm(x2d, wi, bi, wo, bo, gamma, beta, *, eps, tm=512, tj=512):
    """Fused BertIntermediate + BertOutput: LN(gelu(x@Wi+bi) @ Wo + bo + x)."""
    M, H = x2d.shape
    inter = wi.shape[1]
    tm = _pick_tile(M, tm, 8)          # bigger tm => Wi/Wo streamed fewer times
    tj = _pick_tile(inter, tj, 128)
    _assert_fits([((tm, H), x2d.dtype), ((H, tj), wi.dtype), ((1, tj), bi.dtype),
                  ((tj, H), wo.dtype), ((1, H), bo.dtype), ((1, H), gamma.dtype),
                  ((1, H), beta.dtype), ((tm, H), x2d.dtype)],
                 scratch_bytes=tm * H * 4)
    return pl.pallas_call(
        functools.partial(_ffn_ln_kernel, eps=eps),
        out_shape=jax.ShapeDtypeStruct((M, H), x2d.dtype),
        grid=(M // tm, inter // tj),
        in_specs=[
            pl.BlockSpec((tm, H), lambda i, j: (i, 0)),   # x row tile (also the residual)
            pl.BlockSpec((H, tj), lambda i, j: (0, j)),   # Wi column slab
            pl.BlockSpec((1, tj), lambda i, j: (0, j)),   # bi slab
            pl.BlockSpec((tj, H), lambda i, j: (j, 0)),   # Wo row slab
            pl.BlockSpec((1, H), lambda i, j: (0, 0)),    # bo
            pl.BlockSpec((1, H), lambda i, j: (0, 0)),    # LN gamma
            pl.BlockSpec((1, H), lambda i, j: (0, 0)),    # LN beta
        ],
        out_specs=pl.BlockSpec((tm, H), lambda i, j: (i, 0)),
        scratch_shapes=[pltpu.VMEM((tm, H), jnp.float32)],
        compiler_params=_cparams("parallel", "arbitrary"),
    )(x2d, wi, bi, wo, bo, gamma, beta)


# ---------------------------------------------------------------------------
# Parameter preparation (hoisted out of the per-call forward)
# ---------------------------------------------------------------------------

def prepare_params(params, mxu_dtype=None):
    """Fold 1/sqrt(hd) into Q, pre-concatenate the fused QKV weight/bias, and
    optionally cast the MXU weight operands (keep biases / LN params in f32)."""
    p = dict(params)
    hidden = p["q_w"].shape[0]
    hd = hidden // p["num_heads"]
    scale = 1.0 / math.sqrt(hd)
    qkv_w = jnp.concatenate([p["q_w"] * scale, p["k_w"], p["v_w"]], axis=1)
    qkv_b = jnp.concatenate([p["q_b"] * scale, p["k_b"], p["v_b"]], axis=1)
    if mxu_dtype is not None:
        qkv_w = qkv_w.astype(mxu_dtype)
        for name in ("ao_w", "i_w", "o_w"):
            p[name] = p[name].astype(mxu_dtype)
    p["qkv_w"] = qkv_w
    p["qkv_b"] = qkv_b
    return p


# ---------------------------------------------------------------------------
# BertMixLayer forward
# ---------------------------------------------------------------------------

def bert_mix_layer_forward(params, hidden_states, attention_mask=None,
                           add_attention=True, add_ffn=True, ratio=None):
    """hidden_states: (B, S, H); attention_mask: (B, S) with 1=keep / 0=mask."""
    B, S, H = hidden_states.shape
    nh = params["num_heads"]
    eps = params["layer_norm_eps"]

    if add_attention:
        qkv_w = params.get("qkv_w")
        qkv_b = params.get("qkv_b")
        if qkv_w is None:                          # fallback if prepare_params wasn't used
            hd = H // nh
            scale = 1.0 / math.sqrt(hd)
            qkv_w = jnp.concatenate([params["q_w"] * scale, params["k_w"], params["v_w"]], axis=1)
            qkv_b = jnp.concatenate([params["q_b"] * scale, params["k_b"], params["v_b"]], axis=1)

        x2d = hidden_states.reshape(B * S, H)
        qkv = linear_bias(x2d, qkv_w, qkv_b).reshape(B, S, 3 * H)   # free reshape, no transpose

        if attention_mask is None:
            mask_add = jnp.zeros((B, 1, S), jnp.float32)
        else:
            mask_add = ((1.0 - attention_mask.astype(jnp.float32))
                        * -10000.0).reshape(B, 1, S)

        # attention core + BertMixSelfOutput fused (ctx never leaves VMEM)
        attention_output = attention_block(
            qkv, mask_add, hidden_states, params["ao_w"], params["ao_b"],
            params["ln1_g"], params["ln1_b"], num_heads=nh, eps=eps, ratio=ratio)
        if not add_ffn:
            return attention_output
    else:
        attention_output = hidden_states

    layer_output = ffn_layernorm(
        attention_output.reshape(B * S, H),
        params["i_w"], params["i_b"], params["o_w"], params["o_b"],
        params["ln2_g"], params["ln2_b"], eps=eps)
    return layer_output.reshape(B, S, H)


# ---------------------------------------------------------------------------
# Deterministic parameter init (synthetic; torch Linear weights pre-transposed)
# ---------------------------------------------------------------------------

def init_params(key, hidden=32, intermediate=64, num_heads=4, eps=1e-12):
    ks = jax.random.split(key, 8)
    std = 0.02
    w = lambda k, shp: (jax.random.normal(k, shp, jnp.float32) * std)
    zeros = lambda n: jnp.zeros((1, n), jnp.float32)
    ones = lambda n: jnp.ones((1, n), jnp.float32)
    return {
        "num_heads": num_heads,
        "layer_norm_eps": eps,
        "q_w": w(ks[0], (hidden, hidden)), "q_b": zeros(hidden),
        "k_w": w(ks[1], (hidden, hidden)), "k_b": zeros(hidden),
        "v_w": w(ks[2], (hidden, hidden)), "v_b": zeros(hidden),
        "ao_w": w(ks[3], (hidden, hidden)), "ao_b": zeros(hidden),
        "ln1_g": ones(hidden), "ln1_b": zeros(hidden),
        "i_w": w(ks[4], (hidden, intermediate)), "i_b": zeros(intermediate),
        "o_w": w(ks[5], (intermediate, hidden)), "o_b": zeros(hidden),
        "ln2_g": ones(hidden), "ln2_b": zeros(hidden),
    }


# ---------------------------------------------------------------------------
# Pure-JAX reference (for correctness check)
# ---------------------------------------------------------------------------

def _reference(params, x, mask, ratio=None):
    B, S, H = x.shape
    nh = params["num_heads"]; hd = H // nh; eps = params["layer_norm_eps"]

    def lin(t, w, b): return t @ w + b
    def ln(t, g, b):
        m = t.mean(-1, keepdims=True); v = ((t - m) ** 2).mean(-1, keepdims=True)
        return (t - m) / jnp.sqrt(v + eps) * g + b

    q = lin(x, params["q_w"], params["q_b"]).reshape(B, S, nh, hd).transpose(0, 2, 1, 3)
    k = lin(x, params["k_w"], params["k_b"]).reshape(B, S, nh, hd).transpose(0, 2, 1, 3)
    v = lin(x, params["v_w"], params["v_b"]).reshape(B, S, nh, hd).transpose(0, 2, 1, 3)
    s = jnp.einsum("bhqd,bhkd->bhqk", q, k) / math.sqrt(hd)
    s = s + ((1.0 - mask.astype(jnp.float32)) * -10000.0)[:, None, None, :]
    p = jax.nn.softmax(s, axis=-1)
    ctx = jnp.einsum("bhqk,bhkd->bhqd", p, v).transpose(0, 2, 1, 3).reshape(B, S, H)
    h = lin(ctx, params["ao_w"], params["ao_b"])
    attn_out = ln(h + x if ratio is None else ratio * h + (1 - ratio) * x,
                  params["ln1_g"], params["ln1_b"])
    inter = lin(attn_out, params["i_w"], params["i_b"])
    inter = 0.5 * inter * (1.0 + jax.lax.erf(inter / jnp.sqrt(2.0)))
    out = lin(inter, params["o_w"], params["o_b"])
    return ln(out + attn_out, params["ln2_g"], params["ln2_b"])


if __name__ == "__main__":
    key = jax.random.PRNGKey(0)
    k_param, k_x = jax.random.split(key)

    B, S, H, NH, INTER = 2, 8, 32, 4, 64
    raw_params = init_params(k_param, hidden=H, intermediate=INTER, num_heads=NH)
    hidden_states = jax.random.normal(k_x, (B, S, H), jnp.float32)
    # last two tokens of batch 1 masked out
    attention_mask = jnp.array([[1] * S, [1] * (S - 2) + [0, 0]], jnp.float32)

    ref = _reference(raw_params, hidden_states, attention_mask)
    ref_mix = _reference(raw_params, hidden_states, attention_mask, ratio=0.5)

    # ---- f32 path (tolerance slightly loosened for the approx EUP reciprocal) ----
    params = prepare_params(raw_params)
    out = jax.block_until_ready(
        bert_mix_layer_forward(params, hidden_states, attention_mask))
    assert out.shape == (B, S, H)
    assert jnp.allclose(out, ref, atol=2e-3, rtol=2e-3), "mismatch vs reference"

    out_mix = jax.block_until_ready(
        bert_mix_layer_forward(params, hidden_states, attention_mask, ratio=0.5))
    assert jnp.allclose(out_mix, ref_mix, atol=2e-3, rtol=2e-3), "mismatch vs reference (ratio)"

    # ---- bf16 MXU-operand path (v6e/v7x recommendation): f32 accumulation/epilogues ----
    params_bf16 = prepare_params(raw_params, mxu_dtype=jnp.bfloat16)
    out_bf16 = jax.block_until_ready(
        bert_mix_layer_forward(params_bf16, hidden_states.astype(jnp.bfloat16),
                               attention_mask))
    assert out_bf16.shape == (B, S, H) and out_bf16.dtype == jnp.bfloat16
    assert jnp.allclose(out_bf16.astype(jnp.float32), ref, atol=1e-1, rtol=1e-1), \
        "mismatch vs reference (bf16 operands)"

    print("KERNEL_OK")
</pallas_src>

<mosaic_0001>
module attributes {stable_mosaic.version = 11 : i64} {
  func.func @_linear_bias_kernel(%arg0: i32, %arg1: i32, %arg2: i32, %arg3: memref<16x32xf32, #tpu.memory_space<vmem>>, %arg4: memref<32x96xf32, #tpu.memory_space<vmem>>, %arg5: memref<1x96xf32, #tpu.memory_space<vmem>>, %arg6: memref<16x96xf32, #tpu.memory_space<vmem>>, %arg7: memref<16x96xf32, #tpu.memory_space<vmem>>) attributes {dimension_semantics = [#tpu.dimension_semantics<parallel>, #tpu.dimension_semantics<parallel>, #tpu.dimension_semantics<arbitrary>], iteration_bounds = array<i64: 1, 1, 1>, scalar_prefetch = 0 : i64, scratch_operands = 1 : i64, tpu.core_type = #tpu.core_type<tc>, window_params = [{transform_indices = @transform_0, window_bounds = array<i64: 16, 32>}, {transform_indices = @transform_1, window_bounds = array<i64: 32, 96>}, {transform_indices = @transform_2, window_bounds = array<i64: 1, 96>}, {transform_indices = @transform_3, window_bounds = array<i64: 16, 96>}]} {
    %c0_i32 = arith.constant 0 : i32
    %0 = arith.cmpi eq, %arg2, %c0_i32 : i32
    %1 = arith.extui %0 : i1 to i32
    %c0_i32_0 = arith.constant 0 : i32
    %2 = arith.cmpi ne, %1, %c0_i32_0 : i32
    scf.if %2 {
      %cst_10 = arith.constant 0.000000e+00 : f32
      %12 = vector.broadcast %cst_10 : f32 to vector<16x96xf32>
      %c0_11 = arith.constant 0 : index
      %c0_12 = arith.constant 0 : index
      %13 = vector.load %arg7[%c0_11, %c0_12] : memref<16x96xf32, #tpu.memory_space<vmem>>, vector<16x96xf32>
      tpu.vector_store %arg7[%c0_11, %c0_12], %12 {strides = array<i32>} : memref<16x96xf32, #tpu.memory_space<vmem>>, vector<16x96xf32>,
    } else {
    }
    %c0 = arith.constant 0 : index
    %c0_1 = arith.constant 0 : index
    %3 = vector.load %arg7[%c0, %c0_1] : memref<16x96xf32, #tpu.memory_space<vmem>>, vector<16x96xf32>
    %c0_2 = arith.constant 0 : index
    %c0_3 = arith.constant 0 : index
    %4 = vector.load %arg3[%c0_2, %c0_3] : memref<16x32xf32, #tpu.memory_space<vmem>>, vector<16x32xf32>
    %c0_4 = arith.constant 0 : index
    %c0_5 = arith.constant 0 : index
    %5 = vector.load %arg4[%c0_4, %c0_5] : memref<32x96xf32, #tpu.memory_space<vmem>>, vector<32x96xf32>
    %cst = arith.constant dense<0.000000e+00> : vector<16x96xf32>
    %6 = tpu.matmul %4, %5, %cst {dimension_numbers = #tpu.dot_dimension_numbers<[1], [0], [0], [1], [0, 0, 1, 1], [], []>} : vector<16x32xf32>, vector<32x96xf32>, vector<16x96xf32> -> vector<16x96xf32>
    %7 = arith.addf %3, %6 : vector<16x96xf32>
    %c0_6 = arith.constant 0 : index
    %c0_7 = arith.constant 0 : index
    %8 = vector.load %arg7[%c0_6, %c0_7] : memref<16x96xf32, #tpu.memory_space<vmem>>, vector<16x96xf32>
    tpu.vector_store %arg7[%c0_6, %c0_7], %7 {strides = array<i32>} : memref<16x96xf32, #tpu.memory_space<vmem>>, vector<16x96xf32>,
    %c0_i32_8 = arith.constant 0 : i32
    %9 = arith.cmpi eq, %arg2, %c0_i32_8 : i32
    %10 = arith.extui %9 : i1 to i32
    %c0_i32_9 = arith.constant 0 : i32
    %11 = arith.cmpi ne, %10, %c0_i32_9 : i32
    scf.if %11 {
      %c0_10 = arith.constant 0 : index
      %c0_11 = arith.constant 0 : index
      %12 = vector.load %arg7[%c0_10, %c0_11] : memref<16x96xf32, #tpu.memory_space<vmem>>, vector<16x96xf32>
      %c0_12 = arith.constant 0 : index
      %c0_13 = arith.constant 0 : index
      %13 = vector.load %arg5[%c0_12, %c0_13] : memref<1x96xf32, #tpu.memory_space<vmem>>, vector<1x96xf32>
      %14 = vector.broadcast %13 : vector<1x96xf32> to vector<16x96xf32>
      %15 = arith.addf %12, %14 : vector<16x96xf32>
      %c0_14 = arith.constant 0 : index
      %c0_15 = arith.constant 0 : index
      %16 = vector.load %arg6[%c0_14, %c0_15] : memref<16x96xf32, #tpu.memory_space<vmem>>, vector<16x96xf32>
      tpu.vector_store %arg6[%c0_14, %c0_15], %15 {strides = array<i32>} : memref<16x96xf32, #tpu.memory_space<vmem>>, vector<16x96xf32>,
    } else {
    }
    return
  }
  func.func @transform_0(%arg0: i32, %arg1: i32, %arg2: i32) -> (i32, i32) {
    %c0_i32 = arith.constant 0 : i32
    return %arg0, %arg2 : i32, i32
  }
  func.func @transform_1(%arg0: i32, %arg1: i32, %arg2: i32) -> (i32, i32) {
    %c0_i32 = arith.constant 0 : i32
    return %arg2, %arg1 : i32, i32
  }
  func.func @transform_2(%arg0: i32, %arg1: i32, %arg2: i32) -> (i32, i32) {
    %c0_i32 = arith.constant 0 : i32
    %c0_i32_0 = arith.constant 0 : i32
    return %c0_i32, %arg1 : i32, i32
  }
  func.func @transform_3(%arg0: i32, %arg1: i32, %arg2: i32) -> (i32, i32) {
    %c0_i32 = arith.constant 0 : i32
    return %arg0, %arg1 : i32, i32
  }
}

</mosaic_0001>

<bundles_post_ra>
// kernel: tpu_custom_call.1
= control target key start
LH: loop header
LB: loop body
LE: loop exit
PB: predicated region body
PF: predicated region fallthrough
CT: control target
= control target key end

     0   :  { %8 = vsyncpa [#allocation4], 0  ;;  %s365_s0 = inlined_call_operand.hbm [shape: f32[16,32], index: 0, kind: input, shape index: {}]   ;;  %s366_s1 = inlined_call_operand.hbm [shape: f32[32,96], index: 1, kind: input, shape index: {}]   ;;  %s367_s2 = inlined_call_operand.vmem [shape: f32[1,96], index: 2, kind: input, shape index: {}]   ;;  %s368_s3 = inlined_call_operand.hbm [shape: f32[16,96], index: 3, kind: output, shape index: {}]  }
   0x1   :  { %9 = vsyncpa [#allocation7], 0 }
   0x2   :  { %10 = vsyncpa [#allocation5], 0  ;;  %s285_s12 = smov [#allocation3]   ;;  %s213_s16 = scalar_lea.hbm %s365_s0, 256 }
   0x3   :  { %s16_s13 = sshll.u32 %s285_s12, 4  ;;  %p214_p0 = scmp.ne.s32.totalorder %s365_s0, %s213_s16  ;;  %s17_s13 = int_to_ptr.vmem [resolvable:$true] %s16_s13 }
   0x4   :  { %p217_p1 = scmp.lt.u32.totalorder %s213_s16, %s365_s0 }
   0x6   :  { %p219_p2 = pnand %p217_p1, %p214_p0 }
   0x8   :  { %222 = shalt.err (!%p219_p2)
}
   0x9   :  { %s223_s21 = scalar_lea.vmem %s17_s13, 256  ;;  %p228_p4 = scmp.lt.s32.totalorder %s17_s13, %s17_s13 }
   0xa   :  { %p224_p3 = scmp.ne.s32.totalorder %s17_s13, %s223_s21  ;;  %p229_p5 = scmp.lt.s32.totalorder %s223_s21, %s223_s21 }
   0xc   :  { %p230_p6 = por %p229_p5, %p228_p4 }
   0xe   :  { %p231_p7 = pnand %p230_p6, %p224_p3 }
  0x10   :  { %234 = shalt.err (!%p231_p7)
}
  0x11   :  { %s286_s22 = smov 128   ;;  %s287_s23 = smov 8  }
  0x12   :  { %22 = dma.hbm_to_vmem [thread:$0]  %s365_s0, 256, %s17_s13, [#allocation4], %s286_s22, %s286_s22, %s287_s23  }
  0x13   :  { %s288_s26 = smov [#allocation6]   ;;  %s235_s30 = scalar_lea.hbm %s366_s1, 512 }
  0x14   :  { %s28_s27 = sshll.u32 %s288_s26, 4  ;;  %p236_p8 = scmp.ne.s32.totalorder %s366_s1, %s235_s30  ;;  %s29_s27 = int_to_ptr.vmem [resolvable:$true] %s28_s27 }
  0x15   :  { %p239_p9 = scmp.lt.u32.totalorder %s235_s30, %s366_s1 }
  0x17   :  { %p241_p10 = pnand %p239_p9, %p236_p8 }
  0x19   :  { %244 = shalt.err (!%p241_p10)
}
  0x1a   :  { %s245_s8 = scalar_lea.vmem %s29_s27, 512  ;;  %p250_p12 = scmp.lt.s32.totalorder %s29_s27, %s29_s27 }
  0x1b   :  { %p246_p11 = scmp.ne.s32.totalorder %s29_s27, %s245_s8  ;;  %p251_p13 = scmp.lt.s32.totalorder %s245_s8, %s245_s8 }
  0x1d   :  { %p252_p0 = por %p251_p13, %p250_p12 }
  0x1f   :  { %p253_p1 = pnand %p252_p0, %p246_p11 }
  0x21   :  { %256 = shalt.err (!%p253_p1)
}
  0x22   :  { %34 = dma.hbm_to_vmem [thread:$0]  %s366_s1, 512, %s29_s27, [#allocation7], %s286_s22, %s286_s22, %s287_s23  }
  0x23   :  { %279 = dma.done.wait [#allocation4], 256  }
  0x24   :  { %280 = vsyncadd [#allocation4], 4294967040 }
  0x25   :  { %281 = dma.done.wait [#allocation7], 512  }
  0x26   :  { %282 = vsyncadd [#allocation7], 4294966784  ;;  %vm47_vm0 = vcmask 785408   ;;  %v289_v0 = vmov 0.0   ;;  %vm58_vm1 = vcmask 261120   ;;  %v54_v1 = vld [vmem:[#allocation6] sm:$0xff] }
  0x27   :  { %49 = vst.msk [vmem:[#allocation2 + $0x8] sm:$0xff] %vm47_vm0, %v289_v0  ;;  %48 = vst.msk [vmem:[#allocation2] sm:$0xff] %vm47_vm0, %v289_v0  ;;  %v55_v2 = vld [vmem:[#allocation6 + $0x8] sm:$0xff]  ;;  %v56_v3 = vld [vmem:[#allocation6 + $0x10] sm:$0xff]  ;;  %s290_s11 = smov [#allocation8]  }
  0x28   :  { %v199_v4 = vpack.c.bf16 %v55_v2, %v54_v1  ;;  %v57_v5 = vld [vmem:[#allocation6 + $0x18] sm:$0xff]  ;;  %v52_v6 = vld [vmem:[#allocation3] sm:$0xff]  ;;  %v181_v15 = vld [vmem:[%s367_s2] ss:$0 sm:$0xff]  ;;  %s166_s12 = sshll.u32 %s290_s11, 4  ;;  %s167_s12 = int_to_ptr.vmem [resolvable:$true] %s166_s12 }
  0x29   :  { %v203_v7 = vpack.c.bf16 %v57_v5, %v56_v3  ;;  %196 = vmatprep.mubr.msk.f32.mxu0 %vm58_vm1, %v52_v6  ;;  %v53_v8 = vld [vmem:[#allocation3 + $0x8] sm:$0xff]  ;;  %s257_s13 = scalar_lea.vmem %s167_s12, 256  ;;  %p262_p3 = scmp.lt.s32.totalorder %s167_s12, %s167_s12 }
  0x2a   :  { %200 = vmatprep.subr.bf16.mxu0 %v199_v4  ;;  %p258_p2 = scmp.ne.s32.totalorder %s167_s12, %s257_s13  ;;  %p263_p4 = scmp.lt.s32.totalorder %s257_s13, %s257_s13 }
  0x2b   :  { %202 = vmatpush3.bf16.msra.mxu0 %v199_v4 }
  0x2c   :  { %204 = vmatprep.subr.bf16.mxu0 %v203_v7  ;;  %p264_p5 = por %p263_p4, %p262_p3 }
  0x2e   :  { %v51_v9 = vld [vmem:[#allocation2 + $0x8] sm:$0xff]  ;;  %v50_v10 = vld [vmem:[#allocation2] sm:$0xff]  ;;  %p265_p6 = pnand %p264_p5, %p258_p2 }
  0x2f   :  { %206 = vmatpush3.bf16.msra.mxu0 %v203_v7 }
  0x32   :  { %197 = vmatmul.mubr.msk.f32.vlgmr.msra.gmra.mrb[0].mxu0 %vm58_vm1, %v53_v8 }
 0x105   :  { %v198_v11 = vpop.f32.mrb[0].mxu0 }
 0x106   :  { %v141_v12 = vadd.f32 %v198_v11, %v51_v9  ;;  %v131_v13 = vpop.f32.mrb[1].mxu0 }
 0x107   :  { %v140_v14 = vadd.f32 %v131_v13, %v50_v10 }
 0x108   :  { %144 = vst.msk [vmem:[#allocation2 + $0x8] sm:$0xff] %vm47_vm0, %v141_v12 }
 0x109   :  { %143 = vst.msk [vmem:[#allocation2] sm:$0xff] %vm47_vm0, %v140_v14 }
 0x10f   :  { %v149_v16 = vld [vmem:[#allocation2 + $0x8] sm:$0xff] }
 0x110   :  { %v148_v17 = vld [vmem:[#allocation2] sm:$0xff]  ;;  %v158_v18 = vadd.f32 %v181_v15, %v149_v16 }
 0x111   :  { %v157_v19 = vadd.f32 %v181_v15, %v148_v17 }
 0x112   :  { %160 = vst.msk [vmem:[#allocation8 + $0x8] sm:$0xff] %vm47_vm0, %v158_v18 }
 0x113   :  { %159 = vst.msk [vmem:[#allocation8] sm:$0xff] %vm47_vm0, %v157_v19 }
 0x114   :  { %268 = shalt.err (!%p265_p6)
}
 0x115   :  { %s269_s15 = scalar_lea.hbm %s368_s3, 256 }
 0x116   :  { %p270_p7 = scmp.ne.s32.totalorder %s368_s3, %s269_s15  ;;  %p273_p8 = scmp.lt.u32.totalorder %s269_s15, %s368_s3 }
 0x118   :  { %p275_p9 = pnand %p273_p8, %p270_p7 }
 0x11a   :  { %278 = shalt.err (!%p275_p9)
}
 0x11b   :  { %172 = dma.vmem_to_hbm [thread:$0]  %s167_s12, 256, %s368_s3, [#allocation5], %s286_s22, %s286_s22, %s287_s23  }
 0x11c   :  { %283 = dma.done.wait [#allocation5], 256  }
 0x11d   :  { %284 = vsyncadd [#allocation5], 4294967040 }
 0x11e   :  { %176 = vsyncpa [#allocation4], 1 }
 0x11f   :  { %177 = vsyncpa [#allocation7], 1 }
 0x120   :  { %178 = vsyncpa [#allocation5], 1 }

</bundles_post_ra>
